<compile_context>
chip_gen: v7x
topology: tpu7x:2x2x1
jax: 0.10.0
libtpu: 0.0.40
codegen_flags: <defaults>
</compile_context>

<pallas_src>
import functools

import jax
import jax.numpy as jnp
from jax import lax
from jax.experimental import pallas as pl
from jax.experimental.pallas import tpu as pltpu

IGNORE_INDEX = 255
_LANES = 128


def _round_up(x, m):
    return ((x + m - 1) // m) * m


def _vmem_capacity_bytes():
    """Per-core VMEM capacity; conservative fallback works on all generations."""
    try:
        info = pltpu.get_tpu_info()
        cap = int(getattr(info, "vmem_capacity_bytes", 0) or 0)
        if cap > 0:
            return cap
    except Exception:
        pass
    return 64 * 1024 * 1024  # safe for v7x (64 MiB/core) and v5e/v6e (128 MiB)


def _ce_kernel(pred_ref, lab_ref, out_ref, loss_acc, cnt_acc, *,
               num_classes, ts_rows, s_per_split, total_rows):
    """Grid = (batch, core_split, spatial_row_blocks_per_split).

    pred_ref : (1, C, Ts, 128) logits (native dtype, upcast per class tile)
    lab_ref  : (1, Ts, 128)    integer labels (widened in-kernel)
    out_ref  : (1, 1, 2, 128)  row 0 = sum of per-pixel CE, row 1 = valid count
    loss_acc / cnt_acc : (Ts, 128) f32 persistent VMEM accumulators
    """
    c = pl.program_id(1)
    s = pl.program_id(2)
    n_s = pl.num_programs(2)

    @pl.when(s == 0)
    def _():
        loss_acc[...] = jnp.zeros_like(loss_acc)
        cnt_acc[...] = jnp.zeros_like(cnt_acc)

    labels = lab_ref[0].astype(jnp.int32)                       # (Ts, 128)

    # Mask rows past the real spatial extent (ragged last tile and clamped
    # duplicate tiles from the core split) -- replaces wrapper-side padding.
    blk = c * s_per_split + s                                   # logical row-block idx
    row_ids = lax.broadcasted_iota(jnp.int32, (ts_rows, _LANES), 0)
    in_range = (blk * ts_rows + row_ids) < total_rows           # (Ts, 128) bool

    valid = (labels != IGNORE_INDEX) & in_range                 # (Ts, 128) bool

    # Unrolled class loop (C is small & static): running max, then exp-sum and
    # target-logit select.  Everything stays dense (Ts, 128) elementwise work.
    m = pred_ref[0, 0].astype(jnp.float32)                      # (Ts, 128)
    for ci in range(1, num_classes):
        m = jnp.maximum(m, pred_ref[0, ci].astype(jnp.float32))
    se = jnp.zeros_like(m)
    sel = jnp.zeros_like(m)
    for ci in range(num_classes):
        xc = pred_ref[0, ci].astype(jnp.float32)
        se = se + jnp.exp(xc - m)
        sel = sel + jnp.where(labels == ci, xc, 0.0)
    lse = m + jnp.log(se)

    loss_acc[...] = loss_acc[...] + jnp.where(valid, lse - sel, 0.0)
    cnt_acc[...] = cnt_acc[...] + valid.astype(jnp.float32)

    @pl.when(s == n_s - 1)
    def _():
        total = jnp.sum(loss_acc[...])
        count = jnp.sum(cnt_acc[...])
        row = lax.broadcasted_iota(jnp.int32, (2, _LANES), 0)
        out_ref[0, 0] = jnp.where(row == 0, total, count)


def class_loss(prediction, class_label):
    """prediction: (N, C, H, W) logits; class_label: (N, H, W) integer labels.

    Returns sum over the batch of per-image mean cross-entropy with
    ignore_index=255 (the iou=False path of the PyTorch `Criterion`).
    """
    N, C, H, W = prediction.shape
    HW = H * W
    HW_128 = _round_up(HW, _LANES)

    if HW_128 != HW:
        # Rare fallback: spatial size not a multiple of 128 lanes.
        # TODO(synk): could avoid this copy with an Element-indexed tail block.
        pred = jnp.pad(prediction.reshape(N, C, HW),
                       ((0, 0), (0, 0), (0, HW_128 - HW)))
        lab = jnp.pad(class_label.reshape(N, HW), ((0, 0), (0, HW_128 - HW)),
                      constant_values=IGNORE_INDEX)
    else:
        pred = prediction.reshape(N, C, HW)
        lab = class_label.reshape(N, HW)

    R = HW_128 // _LANES                       # rows of 128 lanes
    pred = pred.reshape(N, C, R, _LANES)       # free contiguous split
    lab = lab.reshape(N, R, _LANES)

    pred_isz = jnp.dtype(pred.dtype).itemsize
    lab_isz = jnp.dtype(lab.dtype).itemsize

    cap = _vmem_capacity_bytes()
    tile_budget = (cap * 3) // 8               # ~24 MiB on v7x, ~48 MiB on v5e/v6e
    per_row = (2 * C * _LANES * pred_isz       # double-buffered logits
               + 2 * _LANES * lab_isz          # double-buffered labels
               + 2 * _LANES * 4                # f32 loss/count accumulators
               + 10 * _LANES * 4)              # elementwise temporaries headroom
    ts_budget = max(8, tile_budget // per_row)

    # Core split: both v7x TensorCores share the spatial loop even at N=1.
    CS = 2 if R >= 16 else 1
    rows_per_split = pl.cdiv(R, CS)
    if rows_per_split <= ts_budget:
        Ts = R if CS == 1 else _round_up(rows_per_split, 8)
    else:
        Ts = max(8, (ts_budget // 8) * 8)

    S_total = pl.cdiv(R, Ts)                   # row blocks covering one image
    S_cs = pl.cdiv(S_total, CS)                # row blocks handled per core split

    Ts_pad = _round_up(Ts, 8)
    vmem_need = (2 * C * Ts_pad * _LANES * pred_isz
                 + 2 * Ts_pad * _LANES * lab_isz
                 + 2 * Ts_pad * _LANES * 4
                 + 10 * Ts_pad * _LANES * 4
                 + 2 * 8 * _LANES * 4)
    vmem_limit = int(min((cap * 3) // 4, max(32 << 20, vmem_need + (2 << 20))))

    kernel = functools.partial(_ce_kernel, num_classes=C, ts_rows=Ts,
                               s_per_split=S_cs, total_rows=R)

    def blk_idx(c, s):
        # Clamp so a ragged core split never issues a fully out-of-bounds DMA;
        # the duplicate tile is zeroed by the in-kernel row mask.
        return jnp.minimum(c * S_cs + s, S_total - 1)

    out = pl.pallas_call(
        kernel,
        out_shape=jax.ShapeDtypeStruct((N, CS, 2, _LANES), jnp.float32),
        grid_spec=pltpu.PrefetchScalarGridSpec(
            num_scalar_prefetch=0,
            grid=(N, CS, S_cs),
            in_specs=[
                pl.BlockSpec((1, C, Ts, _LANES),
                             lambda b, c, s: (b, 0, blk_idx(c, s), 0)),
                pl.BlockSpec((1, Ts, _LANES),
                             lambda b, c, s: (b, blk_idx(c, s), 0)),
            ],
            out_specs=pl.BlockSpec((1, 1, 2, _LANES),
                                   lambda b, c, s: (b, c, 0, 0)),
            scratch_shapes=[
                pltpu.VMEM((Ts, _LANES), jnp.float32),
                pltpu.VMEM((Ts, _LANES), jnp.float32),
            ],
        ),
        compiler_params=pltpu.CompilerParams(
            dimension_semantics=("parallel", "parallel", "arbitrary"),
            vmem_limit_bytes=vmem_limit,
        ),
    )(pred, lab)

    sums = out[:, :, 0, 0].sum(axis=1)         # (N,) per-image CE sums
    cnts = out[:, :, 1, 0].sum(axis=1)         # (N,) per-image valid counts
    # Mean over valid pixels per image (NaN if every pixel is ignored, matching
    # PyTorch CrossEntropyLoss), summed over the batch like the Python loop.
    return jnp.sum(sums / cnts)


# TODO(synk): the iou=True branch (calculate_iou + meter.update) mutates
# Python-side meter objects and does not contribute to the returned loss; it is
# not implemented in-kernel.


def _ref_loss(prediction, labels):
    """Pure-JAX reference of the PyTorch forward (iou=False path)."""
    N, C, H, W = prediction.shape
    total = jnp.float32(0.0)
    for b in range(N):
        logits = prediction[b].reshape(C, -1).T.astype(jnp.float32)   # (HW, C)
        lb = labels[b].reshape(-1)
        valid = lb != IGNORE_INDEX
        logp = jax.nn.log_softmax(logits, axis=-1)
        sel = jnp.take_along_axis(logp, jnp.where(valid, lb, 0)[:, None],
                                  axis=-1)[:, 0]
        total = total + jnp.sum(jnp.where(valid, -sel, 0.0)) / jnp.sum(valid)
    return total


if __name__ == "__main__":
    key = jax.random.PRNGKey(0)
    k1, k2, k3 = jax.random.split(key, 3)

    # Small shapes consistent with the module: (N, 3, H, W) logits, (N, H, W) labels.
    N, C, H, W = 2, 3, 16, 16
    prediction = jax.random.normal(k1, (N, C, H, W), dtype=jnp.float32)
    labels = jax.random.randint(k2, (N, H, W), 0, C).astype(jnp.int32)
    ignore_mask = jax.random.uniform(k3, (N, H, W)) < 0.1
    labels = jnp.where(ignore_mask, IGNORE_INDEX, labels)

    loss = jax.block_until_ready(class_loss(prediction, labels))
    ref = jax.block_until_ready(_ref_loss(prediction, labels))

    assert abs(float(loss) - float(ref)) < 1e-3, (float(loss), float(ref))
    print("KERNEL_OK")
</pallas_src>

<mosaic_0001>
module attributes {stable_mosaic.version = 11 : i64} {
  func.func @_ce_kernel(%arg0: i32, %arg1: i32, %arg2: i32, %arg3: memref<1x3x2x128xf32, #tpu.memory_space<vmem>>, %arg4: memref<1x2x128xi32, #tpu.memory_space<vmem>>, %arg5: memref<1x1x2x128xf32, #tpu.memory_space<vmem>>, %arg6: memref<2x128xf32, #tpu.memory_space<vmem>>, %arg7: memref<2x128xf32, #tpu.memory_space<vmem>>) attributes {dimension_semantics = [#tpu.dimension_semantics<parallel>, #tpu.dimension_semantics<parallel>, #tpu.dimension_semantics<arbitrary>], iteration_bounds = array<i64: 2, 1, 1>, scalar_prefetch = 0 : i64, scratch_operands = 2 : i64, tpu.core_type = #tpu.core_type<tc>, window_params = [{transform_indices = @transform_0, window_bounds = array<i64: 1, 3, 2, 128>}, {transform_indices = @transform_1, window_bounds = array<i64: 1, 2, 128>}, {transform_indices = @transform_2, window_bounds = array<i64: 1, 1, 2, 128>}]} {
    %c0_i32 = arith.constant 0 : i32
    %0 = arith.cmpi eq, %arg2, %c0_i32 : i32
    %1 = arith.extui %0 : i1 to i32
    %c0_i32_0 = arith.constant 0 : i32
    %2 = arith.cmpi ne, %1, %c0_i32_0 : i32
    scf.if %2 {
      %cst_44 = arith.constant 0.000000e+00 : f32
      %72 = vector.broadcast %cst_44 : f32 to vector<2x128xf32>
      %c0_45 = arith.constant 0 : index
      %c0_46 = arith.constant 0 : index
      %73 = vector.load %arg6[%c0_45, %c0_46] : memref<2x128xf32, #tpu.memory_space<vmem>>, vector<2x128xf32>
      tpu.vector_store %arg6[%c0_45, %c0_46], %72 {strides = array<i32>} : memref<2x128xf32, #tpu.memory_space<vmem>>, vector<2x128xf32>,
      %cst_47 = arith.constant 0.000000e+00 : f32
      %74 = vector.broadcast %cst_47 : f32 to vector<2x128xf32>
      %c0_48 = arith.constant 0 : index
      %c0_49 = arith.constant 0 : index
      %75 = vector.load %arg7[%c0_48, %c0_49] : memref<2x128xf32, #tpu.memory_space<vmem>>, vector<2x128xf32>
      tpu.vector_store %arg7[%c0_48, %c0_49], %74 {strides = array<i32>} : memref<2x128xf32, #tpu.memory_space<vmem>>, vector<2x128xf32>,
    } else {
    }
    %c0 = arith.constant 0 : index
    %c0_1 = arith.constant 0 : index
    %c0_2 = arith.constant 0 : index
    %3 = vector.load %arg4[%c0, %c0_1, %c0_2] : memref<1x2x128xi32, #tpu.memory_space<vmem>>, vector<1x2x128xi32>
    %4 = vector.shape_cast %3 : vector<1x2x128xi32> to vector<2x128xi32>
    %c1_i32 = arith.constant 1 : i32
    %5 = arith.muli %arg1, %c1_i32 : i32
    %6 = arith.addi %5, %arg2 : i32
    %7 = tpu.iota {dimensions = array<i32: 0>} : vector<2x128xi32>
    %c2_i32 = arith.constant 2 : i32
    %8 = arith.muli %6, %c2_i32 : i32
    %9 = vector.broadcast %8 : i32 to vector<2x128xi32>
    %10 = arith.addi %9, %7 : vector<2x128xi32>
    %c2_i32_3 = arith.constant 2 : i32
    %11 = vector.broadcast %c2_i32_3 : i32 to vector<2x128xi32>
    %12 = arith.cmpi slt, %10, %11 : vector<2x128xi32>
    %c255_i32 = arith.constant 255 : i32
    %13 = vector.broadcast %c255_i32 : i32 to vector<2x128xi32>
    %14 = arith.cmpi ne, %4, %13 : vector<2x128xi32>
    %15 = arith.andi %14, %12 : vector<2x128xi1>
    %c0_4 = arith.constant 0 : index
    %c0_5 = arith.constant 0 : index
    %c0_6 = arith.constant 0 : index
    %c0_7 = arith.constant 0 : index
    %16 = vector.load %arg3[%c0_4, %c0_5, %c0_6, %c0_7] : memref<1x3x2x128xf32, #tpu.memory_space<vmem>>, vector<1x1x2x128xf32>
    %17 = vector.shape_cast %16 : vector<1x1x2x128xf32> to vector<2x128xf32>
    %c0_8 = arith.constant 0 : index
    %c1 = arith.constant 1 : index
    %c0_9 = arith.constant 0 : index
    %c0_10 = arith.constant 0 : index
    %18 = vector.load %arg3[%c0_8, %c1, %c0_9, %c0_10] : memref<1x3x2x128xf32, #tpu.memory_space<vmem>>, vector<1x1x2x128xf32>
    %19 = vector.shape_cast %18 : vector<1x1x2x128xf32> to vector<2x128xf32>
    %20 = arith.maximumf %17, %19 : vector<2x128xf32>
    %c0_11 = arith.constant 0 : index
    %c2 = arith.constant 2 : index
    %c0_12 = arith.constant 0 : index
    %c0_13 = arith.constant 0 : index
    %21 = vector.load %arg3[%c0_11, %c2, %c0_12, %c0_13] : memref<1x3x2x128xf32, #tpu.memory_space<vmem>>, vector<1x1x2x128xf32>
    %22 = vector.shape_cast %21 : vector<1x1x2x128xf32> to vector<2x128xf32>
    %23 = arith.maximumf %20, %22 : vector<2x128xf32>
    %cst = arith.constant 0.000000e+00 : f32
    %24 = vector.broadcast %cst : f32 to vector<2x128xf32>
    %cst_14 = arith.constant 0.000000e+00 : f32
    %25 = vector.broadcast %cst_14 : f32 to vector<2x128xf32>
    %c0_15 = arith.constant 0 : index
    %c0_16 = arith.constant 0 : index
    %c0_17 = arith.constant 0 : index
    %c0_18 = arith.constant 0 : index
    %26 = vector.load %arg3[%c0_15, %c0_16, %c0_17, %c0_18] : memref<1x3x2x128xf32, #tpu.memory_space<vmem>>, vector<1x1x2x128xf32>
    %27 = vector.shape_cast %26 : vector<1x1x2x128xf32> to vector<2x128xf32>
    %28 = arith.subf %27, %23 : vector<2x128xf32>
    %29 = math.exp %28 : vector<2x128xf32>
    %30 = arith.addf %24, %29 : vector<2x128xf32>
    %c0_i32_19 = arith.constant 0 : i32
    %31 = vector.broadcast %c0_i32_19 : i32 to vector<2x128xi32>
    %32 = arith.cmpi eq, %4, %31 : vector<2x128xi32>
    %cst_20 = arith.constant 0.000000e+00 : f32
    %33 = vector.broadcast %cst_20 : f32 to vector<2x128xf32>
    %34 = arith.select %32, %27, %33 : vector<2x128xi1>, vector<2x128xf32>
    %35 = arith.addf %25, %34 : vector<2x128xf32>
    %c0_21 = arith.constant 0 : index
    %c1_22 = arith.constant 1 : index
    %c0_23 = arith.constant 0 : index
    %c0_24 = arith.constant 0 : index
    %36 = vector.load %arg3[%c0_21, %c1_22, %c0_23, %c0_24] : memref<1x3x2x128xf32, #tpu.memory_space<vmem>>, vector<1x1x2x128xf32>
    %37 = vector.shape_cast %36 : vector<1x1x2x128xf32> to vector<2x128xf32>
    %38 = arith.subf %37, %23 : vector<2x128xf32>
    %39 = math.exp %38 : vector<2x128xf32>
    %40 = arith.addf %30, %39 : vector<2x128xf32>
    %c1_i32_25 = arith.constant 1 : i32
    %41 = vector.broadcast %c1_i32_25 : i32 to vector<2x128xi32>
    %42 = arith.cmpi eq, %4, %41 : vector<2x128xi32>
    %cst_26 = arith.constant 0.000000e+00 : f32
    %43 = vector.broadcast %cst_26 : f32 to vector<2x128xf32>
    %44 = arith.select %42, %37, %43 : vector<2x128xi1>, vector<2x128xf32>
    %45 = arith.addf %35, %44 : vector<2x128xf32>
    %c0_27 = arith.constant 0 : index
    %c2_28 = arith.constant 2 : index
    %c0_29 = arith.constant 0 : index
    %c0_30 = arith.constant 0 : index
    %46 = vector.load %arg3[%c0_27, %c2_28, %c0_29, %c0_30] : memref<1x3x2x128xf32, #tpu.memory_space<vmem>>, vector<1x1x2x128xf32>
    %47 = vector.shape_cast %46 : vector<1x1x2x128xf32> to vector<2x128xf32>
    %48 = arith.subf %47, %23 : vector<2x128xf32>
    %49 = math.exp %48 : vector<2x128xf32>
    %50 = arith.addf %40, %49 : vector<2x128xf32>
    %c2_i32_31 = arith.constant 2 : i32
    %51 = vector.broadcast %c2_i32_31 : i32 to vector<2x128xi32>
    %52 = arith.cmpi eq, %4, %51 : vector<2x128xi32>
    %cst_32 = arith.constant 0.000000e+00 : f32
    %53 = vector.broadcast %cst_32 : f32 to vector<2x128xf32>
    %54 = arith.select %52, %47, %53 : vector<2x128xi1>, vector<2x128xf32>
    %55 = arith.addf %45, %54 : vector<2x128xf32>
    %56 = math.log %50 : vector<2x128xf32>
    %57 = arith.addf %23, %56 : vector<2x128xf32>
    %c0_33 = arith.constant 0 : index
    %c0_34 = arith.constant 0 : index
    %58 = vector.load %arg6[%c0_33, %c0_34] : memref<2x128xf32, #tpu.memory_space<vmem>>, vector<2x128xf32>
    %59 = arith.subf %57, %55 : vector<2x128xf32>
    %cst_35 = arith.constant 0.000000e+00 : f32
    %60 = vector.broadcast %cst_35 : f32 to vector<2x128xf32>
    %61 = arith.select %15, %59, %60 : vector<2x128xi1>, vector<2x128xf32>
    %62 = arith.addf %58, %61 : vector<2x128xf32>
    %c0_36 = arith.constant 0 : index
    %c0_37 = arith.constant 0 : index
    %63 = vector.load %arg6[%c0_36, %c0_37] : memref<2x128xf32, #tpu.memory_space<vmem>>, vector<2x128xf32>
    tpu.vector_store %arg6[%c0_36, %c0_37], %62 {strides = array<i32>} : memref<2x128xf32, #tpu.memory_space<vmem>>, vector<2x128xf32>,
    %c0_38 = arith.constant 0 : index
    %c0_39 = arith.constant 0 : index
    %64 = vector.load %arg7[%c0_38, %c0_39] : memref<2x128xf32, #tpu.memory_space<vmem>>, vector<2x128xf32>
    %65 = arith.extui %15 : vector<2x128xi1> to vector<2x128xi32>
    %66 = arith.sitofp %65 : vector<2x128xi32> to vector<2x128xf32>
    %67 = arith.addf %64, %66 : vector<2x128xf32>
    %c0_40 = arith.constant 0 : index
    %c0_41 = arith.constant 0 : index
    %68 = vector.load %arg7[%c0_40, %c0_41] : memref<2x128xf32, #tpu.memory_space<vmem>>, vector<2x128xf32>
    tpu.vector_store %arg7[%c0_40, %c0_41], %67 {strides = array<i32>} : memref<2x128xf32, #tpu.memory_space<vmem>>, vector<2x128xf32>,
    %c0_i32_42 = arith.constant 0 : i32
    %69 = arith.cmpi eq, %arg2, %c0_i32_42 : i32
    %70 = arith.extui %69 : i1 to i32
    %c0_i32_43 = arith.constant 0 : i32
    %71 = arith.cmpi ne, %70, %c0_i32_43 : i32
    scf.if %71 {
      %c0_44 = arith.constant 0 : index
      %c0_45 = arith.constant 0 : index
      %72 = vector.load %arg6[%c0_44, %c0_45] : memref<2x128xf32, #tpu.memory_space<vmem>>, vector<2x128xf32>
      %73 = vector.shape_cast %72 : vector<2x128xf32> to vector<1x2x128xf32>
      %cst_46 = arith.constant dense<0.000000e+00> : vector<1xf32>
      %74 = vector.multi_reduction <add>, %73, %cst_46 [1, 2] : vector<1x2x128xf32> to vector<1xf32>
      %75 = vector.shape_cast %74 : vector<1xf32> to vector<1x1x1xf32>
      %76 = vector.extract %75[0, 0, 0] : f32 from vector<1x1x1xf32>
      %c0_47 = arith.constant 0 : index
      %c0_48 = arith.constant 0 : index
      %77 = vector.load %arg7[%c0_47, %c0_48] : memref<2x128xf32, #tpu.memory_space<vmem>>, vector<2x128xf32>
      %78 = vector.shape_cast %77 : vector<2x128xf32> to vector<1x2x128xf32>
      %cst_49 = arith.constant dense<0.000000e+00> : vector<1xf32>
      %79 = vector.multi_reduction <add>, %78, %cst_49 [1, 2] : vector<1x2x128xf32> to vector<1xf32>
      %80 = vector.shape_cast %79 : vector<1xf32> to vector<1x1x1xf32>
      %81 = vector.extract %80[0, 0, 0] : f32 from vector<1x1x1xf32>
      %82 = tpu.iota {dimensions = array<i32: 0>} : vector<2x128xi32>
      %c0_i32_50 = arith.constant 0 : i32
      %83 = vector.broadcast %c0_i32_50 : i32 to vector<2x128xi32>
      %84 = arith.cmpi eq, %82, %83 : vector<2x128xi32>
      %85 = vector.broadcast %76 : f32 to vector<2x128xf32>
      %86 = vector.broadcast %81 : f32 to vector<2x128xf32>
      %87 = arith.select %84, %85, %86 : vector<2x128xi1>, vector<2x128xf32>
      %c0_51 = arith.constant 0 : index
      %c0_52 = arith.constant 0 : index
      %c0_53 = arith.constant 0 : index
      %c0_54 = arith.constant 0 : index
      %88 = vector.load %arg5[%c0_51, %c0_52, %c0_53, %c0_54] : memref<1x1x2x128xf32, #tpu.memory_space<vmem>>, vector<1x1x2x128xf32>
      %89 = vector.shape_cast %88 : vector<1x1x2x128xf32> to vector<2x128xf32>
      %90 = vector.shape_cast %87 : vector<2x128xf32> to vector<1x1x2x128xf32>
      tpu.vector_store %arg5[%c0_51, %c0_52, %c0_53, %c0_54], %90 {strides = array<i32>} : memref<1x1x2x128xf32, #tpu.memory_space<vmem>>, vector<1x1x2x128xf32>,
    } else {
    }
    return
  }
  func.func @transform_0(%arg0: i32, %arg1: i32, %arg2: i32) -> (i32, i32, i32, i32) {
    %c1_i32 = arith.constant 1 : i32
    %0 = arith.muli %arg1, %c1_i32 : i32
    %1 = arith.addi %0, %arg2 : i32
    %c0_i32 = arith.constant 0 : i32
    %2 = arith.minsi %1, %c0_i32 : i32
    %c0_i32_0 = arith.constant 0 : i32
    %c0_i32_1 = arith.constant 0 : i32
    %c0_i32_2 = arith.constant 0 : i32
    return %arg0, %c0_i32_0, %2, %c0_i32_1 : i32, i32, i32, i32
  }
  func.func @transform_1(%arg0: i32, %arg1: i32, %arg2: i32) -> (i32, i32, i32) {
    %c1_i32 = arith.constant 1 : i32
    %0 = arith.muli %arg1, %c1_i32 : i32
    %1 = arith.addi %0, %arg2 : i32
    %c0_i32 = arith.constant 0 : i32
    %2 = arith.minsi %1, %c0_i32 : i32
    %c0_i32_0 = arith.constant 0 : i32
    %c0_i32_1 = arith.constant 0 : i32
    return %arg0, %2, %c0_i32_0 : i32, i32, i32
  }
  func.func @transform_2(%arg0: i32, %arg1: i32, %arg2: i32) -> (i32, i32, i32, i32) {
    %c0_i32 = arith.constant 0 : i32
    %c0_i32_0 = arith.constant 0 : i32
    %c0_i32_1 = arith.constant 0 : i32
    return %arg0, %arg1, %c0_i32, %c0_i32_0 : i32, i32, i32, i32
  }
}

</mosaic_0001>

<bundles_post_ra>
// kernel: tpu_custom_call.1
= control target key start
LH: loop header
LB: loop body
LE: loop exit
PB: predicated region body
PF: predicated region fallthrough
CT: control target
= control target key end

     0   :  { %7 = vsyncpa [#allocation5], 0  ;;  %s963_s0 = inlined_call_operand.hbm [shape: f32[2,3,2,128], index: 0, kind: input, shape index: {}]   ;;  %s964_s1 = inlined_call_operand.hbm [shape: s32[2,2,128], index: 1, kind: input, shape index: {}]   ;;  %s965_s2 = inlined_call_operand.hbm [shape: f32[2,1,2,128], index: 2, kind: output, shape index: {}]  }
   0x1   :  { %9 = vsyncpa [#allocation5 + $0x1], 0 }
   0x2   :  { %10 = vsyncpa [#allocation8], 0 }
   0x3   :  { %12 = vsyncpa [#allocation8 + $0x1], 0 }
   0x4   :  { %13 = vsyncpa [#allocation6], 0 }
   0x5   :  { %15 = vsyncpa [#allocation6 + $0x1], 0  ;;  %s732_s9 = smov 0   ;;  %s734_s10 = smov 0  }
   0x6   :  { %s736_s11 = smov 0   ;;  %s738_s12 = smov 0  }
   0x7   :  { %s740_s13 = smov 0   ;;  %s742_s14 = smov 0  }
   0x8 LB: > { %s461_s15 = sadd.s32 4294967295, %s709_s14   ;;  %s462_s16 = sadd.s32 4294967294, %s709_s14   ;;  %s709_s14 = sphi %s742_s14, %s21_s14   ;;  %s705_s13 = sphi %s740_s13, %s986_s13   ;;  %s701_s12 = sphi %s738_s12, %s985_s12   ;;  %s697_s11 = sphi %s736_s11, %s984_s11   ;;  %s693_s10 = sphi %s734_s10, %s983_s10   ;;  %s689_s9 = sphi %s732_s9, %s982_s9  }
   0x9   : > { %s40_s17 = sadd.s32 1, %s705_s13  ;;  %s55_s18 = sadd.s32 1, %s697_s11 }
   0xa   : > { %p42_p0 = scmp.ge.s32.totalorder %s40_s17, 2  ;;  %p62_p1 = scmp.ne.s32.totalorder %s697_s11, %s693_s10 }
   0xb   : > { %p63_p2 = scmp.eq.s32.totalorder %s709_s14, 0  ;;  %p68_p3 = scmp.ne.s32.totalorder %s693_s10, %s689_s9 }
   0xc   : > { %s988_s17 = smov (%p42_p0, %s40_s17), 0  ;;  %p69_p5 = scmp.eq.s32.totalorder %s461_s15, 0 }
   0xd   : > { %p773_p4 = por %p63_p2, %p62_p1  ;;  %s50_s20 = ssub.s32 %s705_s13, %s988_s17 }
   0xe   : > { %p128_p6 = scmp.eq.s32.totalorder %s461_s15, 1  ;;  %p53_p7 = scmp.eq.s32.totalorder %s50_s20, 0 }
   0xf   : > { %p779_p8 = por %p69_p5, %p68_p3  ;;  %p134_p10 = scmp.eq.s32.totalorder %s462_s16, 1 }
  0x10   : > { %p783_p9 = por %p128_p6, %p62_p1  ;;  %p502_p13 = scmp.lt.s32.totalorder %s709_s14, 2 }
  0x11   : > { %s969_s21 = scalar_select %p779_p8, 1, 0 }
  0x12   : > { %s970_s22 = scalar_select %p783_p9, 1, 0 }
  0x13   : > { %s788_s23 = scalar_select %p53_p7, %s697_s11, %s55_s18  }
  0x14   : > { %p790_p11 = por %p134_p10, %p68_p3  ;;  %s797_s25 = sand.u32 1, %s697_s11  }
  0x15   : > { %s478_s26 = smul.u32 6, %s797_s25  ;;  %p803_p0 = pnand %p502_p13, %p773_p4 }
  0x16   : > { %s971_s24 = scalar_select %p790_p11, 1, 0 }
  0x17   : > { %s479_s27 = smul.u32 96, %s705_s13  ;;  %s158_s4 = scalar_lea.vmem [#allocation4], %s478_s26 }
  0x18   : > { %s169_s5 = sshll.u32 %s158_s4, 4  ;;  %s155_s6 = scalar_lea.sflag [#allocation5], %s797_s25  ;;  %s812_s5 = int_to_ptr.vmem [resolvable:$true] %s169_s5 }
  0x19   : > { %s810_s3 = scalar_lea.hbm %s963_s0, %s479_s27  ;;  %p565_p3 = pneg %p803_p0 }
  0x1a   : > { %s563_s7 = scalar_lea.hbm %s810_s3, 96  ;;  %s568_s16 = scalar_lea.hbm %s963_s0, 192 }
  0x1b   : > { %p564_p2 = scmp.ne.s32.totalorder %s810_s3, %s563_s7  ;;  %p569_p6 = scmp.lt.u32.totalorder %s810_s3, %s963_s0 }
  0x1c   : > { %p570_p7 = scmp.lt.u32.totalorder %s568_s16, %s563_s7  ;;  %p572_p13 = scmp.lt.u32.totalorder %s563_s7, %s810_s3 }
  0x1d   : > { %p566_p4 = pnand %p565_p3, %p564_p2 }
  0x1e   : > { %p571_p10 = por %p570_p7, %p569_p6 }
  0x1f   : > { %p567_p5 = pneg %p566_p4 }
  0x20   : > { %p573_p12 = por %p572_p13, %p571_p10 }
  0x22   : > { %p574_p1 = pnand %p573_p12, %p567_p5 }
  0x24   : > { %577 = shalt.err (!%p574_p1)
}
  0x25   : > { %s578_s20 = scalar_lea.vmem %s812_s5, 96  ;;  %s711_s26 = smov [#allocation4]  }
  0x26   : > { %p579_p2 = scmp.ne.s32.totalorder %s812_s5, %s578_s20  ;;  %s583_s27 = sshll.u32 %s711_s26, 4  ;;  %s584_s27 = int_to_ptr.vmem [resolvable:$false] %s583_s27 }
  0x27   : > { %s585_s29 = scalar_lea.vmem %s584_s27, 192  ;;  %p586_p9 = scmp.lt.s32.totalorder %s812_s5, %s584_s27 }
  0x28   : > { %p581_p4 = pnand %p579_p2, %p565_p3  ;;  %p587_p6 = scmp.lt.s32.totalorder %s585_s29, %s578_s20 }
  0x2a   : > { %p582_p11 = pneg %p581_p4  ;;  %p588_p7 = por %p587_p6, %p586_p9 }
  0x2c   : > { %p589_p10 = pnand %p588_p7, %p582_p11 }
  0x2e   : > { %592 = shalt.err (!%p589_p10)
}
  0x2f   : > { %s712_s30 = smov 32   ;;  %s713_s4 = smov 2  }
  0x30   : > { %494 = dma.hbm_to_vmem [thread:$0]  (!%p803_p0), %s810_s3, 96, %s812_s5, %s155_s6, %s712_s30, %s712_s30, %s713_s4  }
  0x31   : > { %p199_p12 = scmp.lt.s32.totalorder %s709_s14, 3  ;;  %s466_s7 = sshll.u32 %s797_s25, 1 }
  0x32   : > { %s467_s8 = sshll.u32 %s705_s13, 5  ;;  %p973_p9 = scmp.ge.s32.totalorder %s709_s14, 1 }
  0x33   : > { %s855_s19 = scalar_lea.hbm %s964_s1, %s467_s8  ;;  %s183_s20 = scalar_lea.vmem [#allocation7], %s466_s7 }
  0x34   : > { %p848_p11 = pnand %p973_p9, %p199_p12  ;;  %s194_s26 = sshll.u32 %s183_s20, 4  ;;  %s195_s26 = int_to_ptr.vmem [resolvable:$true] %s194_s26 }
  0x35   : > { %s180_s3 = scalar_lea.sflag [#allocation8], %s797_s25  ;;  %s593_s5 = scalar_lea.hbm %s855_s19, 32 }
  0x36   : > { %s974_s15 = scalar_select %p848_p11, 1, 0 }
  0x37   : > { %p594_p1 = scmp.ne.s32.totalorder %s855_s19, %s593_s5  ;;  %s598_s29 = scalar_lea.hbm %s964_s1, 64 }
  0x38   : > { %p599_p2 = scmp.lt.u32.totalorder %s855_s19, %s964_s1  ;;  %p600_p4 = scmp.lt.u32.totalorder %s598_s29, %s593_s5 }
  0x39   : > { %p596_p5 = pnand %p594_p1, %p565_p3  ;;  %p602_p7 = scmp.lt.u32.totalorder %s593_s5, %s855_s19 }
  0x3a   : > { %p601_p6 = por %p600_p4, %p599_p2 }
  0x3b   : > { %p597_p13 = pneg %p596_p5 }
  0x3c   : > { %p603_p10 = por %p602_p7, %p601_p6 }
  0x3e   : > { %p604_p12 = pnand %p603_p10, %p597_p13 }
  0x40   : > { %607 = shalt.err (!%p604_p12)
}
  0x41   : > { %s608_s25 = scalar_lea.vmem %s195_s26, 32  ;;  %s714_s7 = smov [#allocation7]  }
  0x42   : > { %p609_p9 = scmp.ne.s32.totalorder %s195_s26, %s608_s25  ;;  %s613_s8 = sshll.u32 %s714_s7, 4  ;;  %s614_s8 = int_to_ptr.vmem [resolvable:$false] %s613_s8 }
  0x43   : > { %s615_s16 = scalar_lea.vmem %s614_s8, 64  ;;  %p616_p8 = scmp.lt.s32.totalorder %s195_s26, %s614_s8 }
  0x44   : > { %p611_p1 = pnand %p609_p9, %p565_p3  ;;  %p617_p11 = scmp.lt.s32.totalorder %s615_s16, %s608_s25 }
  0x46   : > { %p612_p5 = pneg %p611_p1  ;;  %p618_p2 = por %p617_p11, %p616_p8 }
  0x48   : > { %p619_p4 = pnand %p618_p2, %p612_p5 }
  0x4a   : > { %622 = shalt.err (!%p619_p4)
}
  0x4b   : > { %497 = dma.hbm_to_vmem [thread:$0]  (!%p803_p0), %s855_s19, 32, %s195_s26, %s180_s3  }
  0x4c   : > { %p975_p13 = scmp.ne.s32.totalorder %s974_s15, 0 }
  0x4d   : > { %s880_s18 = sand.u32 (!%p975_p13), 1, %s693_s10   ;;  %p976_p3 = scmp.ne.s32.totalorder (!%p975_p13), %s969_s21, 0 }
  0x4e   : > { %203 = sbr.rel (%p975_p13) target bundleno = 368 (0x170), region = 28  ;;  %s206_s5 = scalar_lea.sflag (!%p975_p13), [#allocation5], %s880_s18 }
  0x4f   : > { %s480_s20 = smul.u32 (!%p975_p13), 6, %s880_s18 }
  0x51   : > { %s209_s6 = scalar_lea.vmem (!%p975_p13), [#allocation4], %s480_s20 }
  0x55   : > { %676 = dma.done.wait (%p976_p3), %s206_s5, 96  }
  0x56   : > { %678 = vsyncadd (%p976_p3), %s206_s5, 4294967200  ;;  %s469_s28 = sshll.u32 %s880_s18, 1  ;;  %s215_s15 = scalar_lea.sflag [#allocation8], %s880_s18 }
  0x57   : > { %s218_s19 = scalar_lea.vmem [#allocation7], %s469_s28 }
  0x58   : > { %680 = dma.done.wait (%p976_p3), %s215_s15, 32  }
  0x59   : > { %682 = vsyncadd (%p976_p3), %s215_s15, 4294967264  ;;  %v258_v0 = vlaneseq  ;;  %v715_v1 = vmov 0.0   ;;  %v256_v3 = vld [vmem:[%s218_s19] sm:$0x3]  ;;  %v266_v4 = vld [vmem:[%s209_s6] sm:$0x3] }
  0x5a   : > { %254 = vst [vmem:[#allocation2] sm:$0x3] %v715_v1  ;;  %255 = vst [vmem:[#allocation3] sm:$0x3] %v715_v1  ;;  %v471_v5 = vld [vmem:[%s209_s6 + $0x2] sm:$0x3] }
  0x5b   : > { %v896_v2 = vshrl.u32 %v258_v0, 7  ;;  %vm264_vm1 = vcmp.ne.s32.totalorder %v256_v3, 255  ;;  %v269_v6 = vmax.f32 %v266_v4, %v471_v5  ;;  %v472_v7 = vld [vmem:[%s209_s6 + $0x4] sm:$0x3]  ;;  %vm277_vm3 = vcmp.eq.s32.totalorder %v256_v3, 0  ;;  %s475_s21 = sshll.u32 %s701_s12, 5 }
  0x5c   : > { %vm284_vm4 = vcmp.eq.s32.totalorder %v256_v3, 1  ;;  %v278_v24 = vsel %vm277_vm3, %v266_v4, 0.0  ;;  %vm291_vm5 = vcmp.eq.s32.totalorder %v256_v3, 2  ;;  %vm311_vm6 = vcmask 1041408   ;;  %s243_s3 = scalar_lea.vmem [#allocation9], %s469_s28  ;;  %s914_s25 = scalar_lea.hbm %s965_s2, %s475_s21 }
  0x5d   : > { %vm263_vm0 = vcmp.lt.s32.totalorder %v896_v2, 2  ;;  %v272_v9 = vmax.f32 %v269_v6, %v472_v7  ;;  %v285_v25 = vsel %vm284_vm4, %v471_v5, 0.0  ;;  %v292_v27 = vsel %vm291_vm5, %v472_v7, 0.0  ;;  %s353_s27 = sshll.u32 %s243_s3, 4  ;;  %s339_s12 = scalar_lea.sflag [#allocation6], %s880_s18  ;;  %s916_s27 = int_to_ptr.vmem [resolvable:$true] %s353_s27 }
  0x5e   : > { %vm899_vm2 = vmand %vm264_vm1, %vm263_vm0  ;;  %v286_v26 = vadd.f32 %v285_v25, %v278_v24  ;;  %vm333_vm7 = vcmp.eq.s32.totalorder %v896_v2, 0  ;;  %s623_s7 = scalar_lea.vmem %s916_s27, 32  ;;  %p979_p0 = scmp.ne.s32.totalorder %s970_s22, 0 }
  0x5f   : > { %v473_v11 = vsel %vm899_vm2, 1.0, %v715_v1  ;;  %v273_v13 = vsub.f32 %v266_v4, %v272_v9  ;;  %v280_v14 = vsub.f32 %v471_v5, %v272_v9  ;;  %v287_v15 = vsub.f32 %v472_v7, %v272_v9  ;;  %p624_p8 = scmp.ne.s32.totalorder %s916_s27, %s623_s7  ;;  %s716_s8 = smov [#allocation9]  }
  0x60   : > { %v293_v29 = vadd.f32 %v292_v27, %v286_v26  ;;  %s627_s16 = sshll.u32 %s716_s8, 4  ;;  %s628_s16 = int_to_ptr.vmem [resolvable:$false] %s627_s16 }
  0x61   : > { %v302_v10 = vld [vmem:[#allocation3] sm:$0x3]  ;;  %v274_v16 = vmul.f32 1.442695, %v273_v13  ;;  %v281_v17 = vmul.f32 1.442695, %v280_v14  ;;  %p625_p11 = pnand %p624_p8, %p979_p0  ;;  %p630_p7 = scmp.lt.s32.totalorder %s916_s27, %s628_s16 }
  0x62   : > { %v305_v12 = vadd.f32 %v473_v11, %v302_v10  ;;  %v288_v18 = vmul.f32 1.442695, %v287_v15  ;;  %v297_v32 = vld [vmem:[#allocation2] sm:$0x3]  ;;  %s629_s20 = scalar_lea.vmem %s628_s16, 64 }
  0x63   : > { %555 = vpow2.f32 %v274_v16  ;;  %p626_p6 = pneg %p625_p11  ;;  %p631_p10 = scmp.lt.s32.totalorder %s629_s20, %s623_s7 }
  0x64   : > { %306 = vst [vmem:[#allocation3] sm:$0x3] %v305_v12  ;;  %557 = vpow2.f32 %v281_v17 }
  0x65   : > { %559 = vpow2.f32 %v288_v18  ;;  %p632_p12 = por %p631_p10, %p630_p7 }
  0x67   : > { %p633_p9 = pnand %p632_p12, %p626_p6 }
  0x6b   : > { %v322_v37 = vld [vmem:[#allocation3] sm:$0x3] }
  0x6c   : > { %v323_v39 = vsel %vm311_vm6, %v322_v37, 0.0 }
  0x6d   : > { %v556_v19 = vpop.eup %555 }
  0x6e   : > { %v558_v20 = vpop.eup %557 }
  0x6f   : > { %v560_v21 = vpop.eup %559  ;;  %v283_v22 = vadd.f32 %v558_v20, %v556_v19 }
  0x71   : > { %v290_v23 = vadd.f32 %v560_v21, %v283_v22 }
  0x73   : > { %561 = vlog2.f32 %v290_v23 }
  0x7d   : > { %v562_v28 = vpop.eup %561 }
  0x7e   : > { %v295_v30 = vmul.f32 0.6931472, %v562_v28 }
  0x80   : > { %v296_v31 = vadd.f32 %v295_v30, %v272_v9 }
  0x82   : > { %v298_v33 = vsub.f32 %v296_v31, %v293_v29 }
  0x84   : > { %v299_v34 = vsel %vm899_vm2, %v298_v33, 0.0 }
  0x85   : > { %v300_v35 = vadd.f32 %v299_v34, %v297_v32 }
  0x87   : > { %301 = vst [vmem:[#allocation2] sm:$0x3] %v300_v35 }
  0x8e   : > { %v310_v36 = vld [vmem:[#allocation2] sm:$0x3] }
  0x8f   : > { %v312_v38 = vsel %vm311_vm6, %v310_v36, 0.0 }
  0x90   : > { %313 = vadd.xlane.f32.xlu0 %v312_v38 }
  0x94   : > { %324 = vadd.xlane.f32.xlu0 %v323_v39 }
 0x11d   : > { %v314_v40 = vpop.xlane.xlu0 %313 }
 0x11e   : > { %v315_v41 = vrot.slane %v314_v40, 4 }
 0x120   : > { %v316_v42 = vadd.f32 %v315_v41, %v314_v40 }
 0x121   : > { %v325_v43 = vpop.xlane.xlu0 %324 }
 0x122   : > { %v317_v44 = vrot.slane %v316_v42, 2  ;;  %v326_v45 = vrot.slane %v325_v43, 4 }
 0x124   : > { %v327_v46 = vadd.f32 %v326_v45, %v325_v43  ;;  %v318_v47 = vadd.f32 %v317_v44, %v316_v42 }
 0x126   : > { %v328_v48 = vrot.slane %v327_v46, 2  ;;  %v319_v49 = vrot.slane %v318_v47, 1 }
 0x128   : > { %v329_v50 = vadd.f32 %v328_v48, %v327_v46  ;;  %v320_v51 = vadd.f32 %v319_v49, %v318_v47 }
 0x12a   : > { %481 = vpush %v320_v51  ;;  %v330_v52 = vrot.slane %v329_v50, 1 }
 0x12c   : > { %v331_v53 = vadd.f32 %v330_v52, %v329_v50 }
 0x12e   : > { %483 = vpush %v331_v53 }
 0x15b   : > { %s482_s26 = spop %481 }
 0x15c   : > { %v334_v54 = vstv %s482_s26 }
 0x15f   : > { %s484_s29 = spop %483 }
 0x160   : > { %v335_v55 = vstv %s484_s29 }
 0x161   : > { %v336_v56 = vsel %vm333_vm7, %v334_v54, %v335_v55 }
 0x162   : > { %337 = vst [vmem:[%s243_s3] sm:$0x3] %v336_v56 }
 0x163   : > { %636 = shalt.err (!%p633_p9)
}
 0x164   : > { %s637_s18 = scalar_lea.hbm %s914_s25, 32  ;;  %s641_s28 = scalar_lea.hbm %s965_s2, 64 }
 0x165   : > { %p638_p1 = scmp.ne.s32.totalorder %s914_s25, %s637_s18  ;;  %p642_p4 = scmp.lt.u32.totalorder %s914_s25, %s965_s2 }
 0x166   : > { %p643_p13 = scmp.lt.u32.totalorder %s641_s28, %s637_s18  ;;  %p645_p8 = scmp.lt.u32.totalorder %s637_s18, %s914_s25 }
 0x167   : > { %p639_p5 = pnand %p638_p1, %p979_p0 }
 0x168   : > { %p644_p3 = por %p643_p13, %p642_p4 }
 0x169   : > { %p640_p2 = pneg %p639_p5 }
 0x16a   : > { %p646_p11 = por %p645_p8, %p644_p3 }
 0x16c   : > { %p647_p6 = pnand %p646_p11, %p640_p2 }
 0x16e   : > { %650 = shalt.err (!%p647_p6)
}
 0x16f   : > { %489 = dma.vmem_to_hbm [thread:$0]  (%p979_p0), %s916_s27, 32, %s914_s25, %s339_s12  }
 0x170 PF: > { %s365_s21 = sand.u32 1, %s689_s9   ;;  %p980_p7 = scmp.ne.s32.totalorder %s971_s24, 0 }
 0x171   : > { %p981_p10 = scmp.ge.s32.totalorder %s709_s14, 2  ;;  %s366_s26 = scalar_lea.sflag [#allocation6], %s365_s21 }
 0x173   : > { %p499_p12 = pnand %p981_p10, %p980_p7 }
 0x175   : > { %684 = dma.done.wait (!%p499_p12), %s366_s26, 32  }
 0x176   : > { %686 = vsyncadd (!%p499_p12), %s366_s26, 4294967264  ;;  %s21_s14 = sadd.s32 1, %s709_s14   ;;  %s982_s9 = smov %s693_s10 }
 0x177   : > { %p18_p9 = scmp.ge.s32.totalorder %s21_s14, 4   ;;  %s983_s10 = smov %s697_s11 }
 0x178   : > { %s984_s11 = smov %s788_s23  ;;  %s985_s12 = smov %s705_s13 }
 0x179   : > { %s986_s13 = smov %s988_s17  ;;  %20 = sbr.rel (!%p18_p9) target bundleno = 8 (0x8), region = 96 }
 0x180   :  { %371 = vsyncpa [#allocation5], 1 }
 0x181   :  { %373 = vsyncpa [#allocation5 + $0x1], 1 }
 0x182   :  { %374 = vsyncpa [#allocation8], 1 }
 0x183   :  { %376 = vsyncpa [#allocation8 + $0x1], 1 }
 0x184   :  { %377 = vsyncpa [#allocation6], 1 }
 0x185   :  { %379 = vsyncpa [#allocation6 + $0x1], 1 }

</bundles_post_ra>
